<compile_context>
chip_gen: v6e
topology: v6e:2x2x1
jax: 0.10.0
libtpu: 0.0.40
codegen_flags: <defaults>
</compile_context>

<pallas_src>
import functools

import jax
import jax.numpy as jnp
from jax import lax
from jax.experimental import pallas as pl
from jax.experimental.pallas import tpu as pltpu


def _round_up(x, m):
    return (x + m - 1) // m * m


def _cdiv(a, b):
    return -(-a // b)


@functools.lru_cache(maxsize=None)
def _roll_caps():
    """Probe pltpu.roll's rotate-direction convention (lane + sublane) once.

    Returns (lane_sgn, sub_sgn, sub_ok) with the sign s such that
    pltpu.roll(x, s * k, axis) == jnp.roll(x, k, axis); sub_ok=False falls the
    kernel back to concatenate-based D shifts.  Runs two tiny pallas_calls
    eagerly at trace time (requires the TPU backend, which this script targets).
    """
    with jax.ensure_compile_time_eval():
        x = (jnp.arange(8, dtype=jnp.float32)[:, None] * 1000.0
             + jnp.arange(128, dtype=jnp.float32)[None, :])

        def lane_probe(x_ref, o_ref):
            o_ref[...] = pltpu.roll(x_ref[...], 1, 1)

        out = pl.pallas_call(
            lane_probe, out_shape=jax.ShapeDtypeStruct((8, 128), jnp.float32))(x)
        if bool(jnp.array_equal(out, jnp.roll(x, 1, axis=1))):
            lane_sgn = 1
        elif bool(jnp.array_equal(out, jnp.roll(x, -1, axis=1))):
            lane_sgn = -1
        else:
            raise RuntimeError("unexpected pltpu.roll lane convention")

        sub_sgn, sub_ok = 1, False
        try:
            def sub_probe(x_ref, o_ref):
                o_ref[...] = pltpu.roll(x_ref[...], 1, 0)

            outs = pl.pallas_call(
                sub_probe, out_shape=jax.ShapeDtypeStruct((8, 128), jnp.float32))(x)
            if bool(jnp.array_equal(outs, jnp.roll(x, 1, axis=0))):
                sub_sgn, sub_ok = 1, True
            elif bool(jnp.array_equal(outs, jnp.roll(x, -1, axis=0))):
                sub_sgn, sub_ok = -1, True
        except Exception:
            sub_ok = False
    return lane_sgn, sub_sgn, sub_ok


def _to_probs(x, num_classes):
    """sigmoid (C==1) or softmax over the channel axis (axis 0 of the block)."""
    if num_classes == 1:
        return jax.nn.sigmoid(x)
    m = jnp.max(x, axis=0, keepdims=True)
    e = jnp.exp(x - m)
    s = jnp.sum(e, axis=0, keepdims=True)
    # exp and the reciprocal share the otherwise-idle EUP slot; approx=False
    # keeps numerics tight (the kernel is VPU/DMA bound, not EUP bound).
    return e * pl.reciprocal(s, approx=False)


def _boundary_sse_kernel(x_ref, t_ref, sse_ref, acc_ref,
                         pprev_ref, plast_ref, tprev_ref, tlast_ref, *,
                         num_classes, H, W, D_true, D_pad, TD,
                         lane_sgn, sub_sgn, sub_ok):
    """One (batch, D-tile) grid step on blocks of shape (C, TD, H*W).

    Emits the 7-point-cross stencil output for planes q = d*TD + i - 1
    (one-plane output lag) so NO look-ahead halo of the inputs is needed; the
    two previous planes are carried in VMEM scratch across D-tiles.
    """
    d = pl.program_id(1)
    nd = pl.num_programs(1)
    C = num_classes
    HW = H * W

    @pl.when(d == 0)
    def _init():
        acc_ref[...] = jnp.zeros_like(acc_ref)
        # zero carries == conv zero padding below plane 0
        pprev_ref[...] = jnp.zeros_like(pprev_ref)
        plast_ref[...] = jnp.zeros_like(plast_ref)
        tprev_ref[...] = jnp.zeros_like(tprev_ref)
        tlast_ref[...] = jnp.zeros_like(tlast_ref)

    probs_c = _to_probs(x_ref[...].astype(jnp.float32), C)      # (C, TD, HW)
    t_c = t_ref[...].astype(jnp.float32)                        # (C, TD, HW)

    # ---- iotas / boundary masks, built once and shared by both stencils ----
    hw = lax.broadcasted_iota(jnp.int32, (1, HW), 1)
    w_i = hw % W
    h_i = hw // W
    m_w_lo = w_i > 0
    m_w_hi = w_i < W - 1
    m_h_lo = h_i > 0
    m_h_hi = h_i < H - 1

    row = lax.broadcasted_iota(jnp.int32, (1, TD, 1), 1)
    is_row0 = row == 0
    plane = d * TD + row          # plane index held by row i of this tile
    q = plane - 1                 # output plane emitted by row i (output lag)

    sh_wm1 = (lane_sgn * 1) % HW
    sh_wp1 = (-lane_sgn * 1) % HW
    sh_hm1 = (lane_sgn * W) % HW
    sh_hp1 = (-lane_sgn * W) % HW
    sh_d1 = sub_sgn % (C * TD)    # shift one plane "down" within the 2-D view

    def inplane(y):
        """Sum of the 4 in-plane (H/W) neighbours with zero padding."""
        n0, n1 = y.shape[0], y.shape[1]
        y2 = y.reshape(n0 * n1, HW)
        terms = []
        if W > 1:
            terms.append(jnp.where(m_w_lo, pltpu.roll(y2, sh_wm1, 1), 0.0))
            terms.append(jnp.where(m_w_hi, pltpu.roll(y2, sh_wp1, 1), 0.0))
        if H > 1:
            terms.append(jnp.where(m_h_lo, pltpu.roll(y2, sh_hm1, 1), 0.0))
            terms.append(jnp.where(m_h_hi, pltpu.roll(y2, sh_hp1, 1), 0.0))
        if not terms:
            return jnp.zeros_like(y)
        s = terms[0]
        for extra in terms[1:]:
            s = s + extra
        return s.reshape(y.shape)

    def dshift1(y, fill):
        """Row i <- row i-1 of y; row 0 <- fill (shape (C, 1, HW))."""
        if sub_ok:
            r = pltpu.roll(y.reshape(C * TD, HW), sh_d1, 0).reshape(C, TD, HW)
            return jnp.where(is_row0, fill, r)
        # Fallback if sublane rolls are unsupported on this backend.
        return jnp.concatenate([fill, y[:, :TD - 1, :]], axis=1)

    # data[q] and data[q-1]: sublane shifts of the current tile + carry fixups.
    cur_p = dshift1(probs_c, plast_ref[...])
    prev_p = dshift1(cur_p, pprev_ref[...])
    cur_t = dshift1(t_c, tlast_ref[...])
    prev_t = dshift1(cur_t, tprev_ref[...])

    # data[q+1] is simply the current tile.  Wrapper-padded planes (>= D_true)
    # hold sigmoid/softmax garbage and only leak into the valid output
    # q = D_true - 1 through this term, so mask them -- only when padding exists.
    next_p = probs_c
    next_t = t_c
    if D_pad != D_true:
        next_p = jnp.where(plane < D_true, probs_c, 0.0)
        # target padding is exactly zero already; no mask needed on next_t.

    s_p = cur_p + prev_p + next_p + inplane(cur_p)
    s_t = cur_t + prev_t + next_t + inplane(cur_t)

    # Effective conv kernel is -1 on the 7-point cross; abs() kills the sign.
    diff = jnp.abs(s_p) - jnp.abs(s_t)
    sq = jnp.sum(diff * diff, axis=0)                            # (TD, HW)

    # Only rows whose output plane lies inside the true volume contribute
    # (drops q = -1 at d == 0 and wrapper-padded planes on trailing tiles).
    q_valid = jnp.logical_and(q >= 0, q < D_true)[0]             # (TD, 1)
    acc_ref[...] += jnp.where(q_valid, sq, 0.0)

    # Carry the last two planes of this tile for the next grid step.
    pprev_ref[...] = probs_c[:, TD - 2:TD - 1, :]
    plast_ref[...] = probs_c[:, TD - 1:TD, :]
    tprev_ref[...] = t_c[:, TD - 2:TD - 1, :]
    tlast_ref[...] = t_c[:, TD - 1:TD, :]

    @pl.when(d == nd - 1)
    def _finalize():
        total = jnp.sum(acc_ref[...])
        if D_pad == D_true:
            # The output-lag scheme never emits plane D_true - 1 when the depth
            # is an exact multiple of the tile: emit it here with a zero
            # next-plane term (conv zero padding above the volume).
            lp = probs_c[:, TD - 1:TD, :]
            lt = t_c[:, TD - 1:TD, :]
            sp = lp + probs_c[:, TD - 2:TD - 1, :] + inplane(lp)
            st = lt + t_c[:, TD - 2:TD - 1, :] + inplane(lt)
            dl = jnp.abs(sp) - jnp.abs(st)
            total = total + jnp.sum(dl * dl)
        sse_ref[0] = total


def _vmem_capacity_bytes():
    try:
        return int(pltpu.get_tpu_info().vmem_capacity_bytes)
    except Exception:
        return 64 * 1024 * 1024          # conservative (v7x-sized) default


def _choose_d_tile(C, D, HW, x_item, t_item, vmem_cap):
    """Largest multiple-of-8 D-tile within a generation-aware VMEM budget, then
    rebalanced so the padded depth wastes as few planes as possible (the tile no
    longer has to divide the depth -- padded planes are masked in-kernel)."""
    if vmem_cap >= 100 * 1024 * 1024:    # 128-MiB VMEM generation (v5e / v6e)
        budget = 48 * 1024 * 1024
    else:                                # 64-MiB generation (v7x)
        budget = 18 * 1024 * 1024
    # Per-plane footprint: 2 pipeline buffers of each input block plus ~12 f32
    # stencil temporaries the compiler materialises per plane.
    per_plane = C * HW * (2 * (x_item + t_item) + 12 * 4)
    td_max = (budget // max(per_plane, 1)) // 8 * 8
    td_max = max(8, min(512, td_max))
    d8 = _round_up(D, 8)
    td_max = min(td_max, d8)
    nt = _cdiv(d8, td_max)
    return _round_up(_cdiv(d8, nt), 8)


def boundary_loss(logits, target, *, kernel_size: int = 3, weight: float = 1.0,
                  dice_weight: float = 1.0, reduction: str = "mean",
                  use_dice: bool = False, d_tile=None, target_dtype=None):
    """Pallas implementation of BoundaryLoss.forward (use_dice=False path).

    `target_dtype` (e.g. jnp.bfloat16) optionally narrows the target at the
    kernel boundary -- exact for one-hot / binary targets and halves its HBM
    read traffic on bandwidth-bound chips (v5e especially).
    """
    # TODO(synk): DiceLoss is not defined in the provided snippet, so the
    # use_dice=True branch (weight*boundary + dice_weight*dice) is not implemented.
    assert not use_dice, "DiceLoss not available; use use_dice=False"
    # Any odd kernel_size >= 3 yields the same effective -1 seven-point cross
    # (the centre is overwritten and the extra taps are zero), so one stencil
    # covers all supported kernel sizes.
    assert kernel_size % 2 == 1 and kernel_size >= 3
    del dice_weight

    B, C, D, H, W = logits.shape
    HW = H * W

    # Lane-dense layout: fold (H, W) -> H*W on the lane axis.
    x = logits.reshape(B, C, D, HW)
    t = target.reshape(B, C, D, HW)
    if target_dtype is not None:
        t = t.astype(target_dtype)

    vmem_cap = _vmem_capacity_bytes()
    if d_tile is None:
        td = _choose_d_tile(C, D, HW, x.dtype.itemsize, t.dtype.itemsize, vmem_cap)
    else:
        assert d_tile % 8 == 0 and d_tile > 0
        td = d_tile
    D_pad = _round_up(D, td)
    n_d = D_pad // td
    if D_pad != D:
        pad = ((0, 0), (0, 0), (0, D_pad - D), (0, 0))
        x = jnp.pad(x, pad)
        t = jnp.pad(t, pad)

    lane_sgn, sub_sgn, sub_ok = _roll_caps()
    kern = functools.partial(
        _boundary_sse_kernel, num_classes=C, H=H, W=W, D_true=D, D_pad=D_pad,
        TD=td, lane_sgn=lane_sgn, sub_sgn=sub_sgn, sub_ok=sub_ok)

    def idx_map(b, d):
        return (b, 0, d, 0)

    # Explicit scoped-VMEM limit sized to the chosen tile (generation-aware cap:
    # v7x has only 64 MiB physical VMEM per TensorCore, so cap well below it).
    in_bytes = 2 * C * td * HW * (x.dtype.itemsize + t.dtype.itemsize)
    scratch_bytes = (td * HW + 4 * C * 8 * HW) * 4
    tmp_bytes = 12 * C * td * HW * 4
    cap = (100 if vmem_cap >= 100 * 1024 * 1024 else 48) * 1024 * 1024
    vmem_limit = int(min(cap, max(32 * 1024 * 1024,
                                  int(1.4 * (in_bytes + scratch_bytes + tmp_bytes)))))

    per_batch_sse = pl.pallas_call(
        kern,
        out_shape=jax.ShapeDtypeStruct((B,), jnp.float32),
        grid=(B, n_d),
        in_specs=[
            pl.BlockSpec((None, C, td, HW), idx_map),   # logits, current tile
            pl.BlockSpec((None, C, td, HW), idx_map),   # target, current tile
        ],
        out_specs=pl.BlockSpec((1,), lambda b, d: (b,),
                               memory_space=pltpu.MemorySpace.SMEM),
        scratch_shapes=[
            pltpu.VMEM((td, HW), jnp.float32),      # per-batch SSE accumulator
            pltpu.VMEM((C, 1, HW), jnp.float32),    # carried probs plane q0-2
            pltpu.VMEM((C, 1, HW), jnp.float32),    # carried probs plane q0-1
            pltpu.VMEM((C, 1, HW), jnp.float32),    # carried target plane q0-2
            pltpu.VMEM((C, 1, HW), jnp.float32),    # carried target plane q0-1
        ],
        compiler_params=pltpu.CompilerParams(
            dimension_semantics=("parallel", "arbitrary"),
            vmem_limit_bytes=vmem_limit),
    )(x, t)
    # TODO(synk): when B == 1 a second "parallel" grid axis (H-split with a
    # one-row halo) would be needed to occupy both v7x TensorCores.

    if reduction == "mean":
        bl = jnp.sum(per_batch_sse) / (B * C * D * H * W)
    elif reduction == "sum":
        bl = jnp.sum(per_batch_sse)
    else:
        # TODO(synk): reduction='none' returns the full elementwise MSE tensor;
        # only 'mean' / 'sum' are supported by this scalar-output kernel.
        raise ValueError(f"unsupported reduction: {reduction}")
    return weight * bl


# ----------------------------- pure-JAX reference -----------------------------

def _make_laplacian_kernel(kernel_size: int = 3) -> jnp.ndarray:
    """Deterministic re-creation of BoundaryLoss._get_laplacian_kernel (used only
    by the reference; the slice assignments overwrite the centre value)."""
    k = jnp.zeros((1, 1, kernel_size, kernel_size, kernel_size), jnp.float32)
    c = kernel_size // 2
    k = k.at[0, 0, c, c, c].set(2.0 * 3.0)
    k = k.at[0, 0, c - 1:c + 2, c, c].set(-1.0)
    k = k.at[0, 0, c, c - 1:c + 2, c].set(-1.0)
    k = k.at[0, 0, c, c, c - 1:c + 2].set(-1.0)
    return k


def _reference_loss(logits, target, kernel_size=3, weight=1.0):
    """Pure-JAX reference that literally follows the PyTorch module."""
    lap = _make_laplacian_kernel(kernel_size)
    C = logits.shape[1]
    probs = jax.nn.sigmoid(logits) if C == 1 else jax.nn.softmax(logits, axis=1)
    pad = kernel_size // 2

    def conv1(x):  # x: (B, 1, D, H, W)
        return lax.conv_general_dilated(
            x, lap, window_strides=(1, 1, 1), padding=[(pad, pad)] * 3,
            dimension_numbers=("NCDHW", "OIDHW", "NCDHW"))

    pb = jnp.concatenate([jnp.abs(conv1(probs[:, i:i + 1])) for i in range(C)], axis=1)
    tb = jnp.concatenate([jnp.abs(conv1(target[:, i:i + 1].astype(jnp.float32)))
                          for i in range(C)], axis=1)
    return weight * jnp.mean((pb - tb) ** 2)


if __name__ == "__main__":
    key = jax.random.PRNGKey(0)
    k1, k2, k3, k4, k5, k6 = jax.random.split(key, 6)

    # 1) Multi-class (softmax), forced 2 D-tiles: exercises the plane carries,
    #    the output-lag scheme and the finalize plane (D % TD == 0).
    B, C, D, H, W = 2, 4, 16, 16, 16
    logits = jax.random.normal(k1, (B, C, D, H, W), jnp.float32)
    labels = jax.random.randint(k2, (B, D, H, W), 0, C)
    target = jax.nn.one_hot(labels, C, axis=1, dtype=jnp.float32)   # (B,C,D,H,W)
    loss = jax.block_until_ready(
        boundary_loss(logits, target, kernel_size=3, weight=1.0,
                      reduction="mean", use_dice=False, d_tile=8))
    ref = jax.block_until_ready(_reference_loss(logits, target))
    assert loss.shape == () and bool(jnp.isfinite(loss))
    assert bool(jnp.allclose(loss, ref, rtol=1e-4, atol=1e-5)), (loss, ref)

    # 2) Binary (sigmoid), auto tile, bf16 target ingest (exact for 0/1 targets).
    logits1 = jax.random.normal(k3, (2, 1, 8, 16, 16), jnp.float32)
    target1 = (jax.random.uniform(k4, (2, 1, 8, 16, 16)) > 0.5).astype(jnp.float32)
    loss1 = jax.block_until_ready(
        boundary_loss(logits1, target1, weight=0.5, reduction="mean",
                      target_dtype=jnp.bfloat16))
    ref1 = jax.block_until_ready(_reference_loss(logits1, target1, weight=0.5))
    assert bool(jnp.allclose(loss1, ref1, rtol=1e-4, atol=1e-5)), (loss1, ref1)

    # 3) Depth not a multiple of the tile (D=12 -> in-kernel masking of the
    #    wrapper-padded planes), C=3, different H/W.
    logits2 = jax.random.normal(k5, (1, 3, 12, 8, 16), jnp.float32)
    labels2 = jax.random.randint(k6, (1, 12, 8, 16), 0, 3)
    target2 = jax.nn.one_hot(labels2, 3, axis=1, dtype=jnp.float32)
    loss2 = jax.block_until_ready(
        boundary_loss(logits2, target2, weight=1.0, reduction="mean"))
    ref2 = jax.block_until_ready(_reference_loss(logits2, target2))
    assert bool(jnp.allclose(loss2, ref2, rtol=1e-4, atol=1e-5)), (loss2, ref2)

    print("KERNEL_OK")
</pallas_src>

<mosaic_0001>
module attributes {stable_mosaic.version = 11 : i64} {
  func.func @lane_probe(%arg0: memref<8x128xf32, #tpu.memory_space<vmem>>, %arg1: memref<8x128xf32, #tpu.memory_space<vmem>>) attributes {dimension_semantics = [], scalar_prefetch = 0 : i64, scratch_operands = 0 : i64, tpu.core_type = #tpu.core_type<tc>} {
    %c0 = arith.constant 0 : index
    %c0_0 = arith.constant 0 : index
    %0 = vector.load %arg0[%c0, %c0_0] : memref<8x128xf32, #tpu.memory_space<vmem>>, vector<8x128xf32>
    %c1_i32 = arith.constant 1 : i32
    %1 = tpu.dynamic_rotate %0 by %c1_i32 dim 1 : vector<8x128xf32>, i32 -> vector<8x128xf32>
    %c0_1 = arith.constant 0 : index
    %c0_2 = arith.constant 0 : index
    %2 = vector.load %arg1[%c0_1, %c0_2] : memref<8x128xf32, #tpu.memory_space<vmem>>, vector<8x128xf32>
    tpu.vector_store %arg1[%c0_1, %c0_2], %1 {strides = array<i32>} : memref<8x128xf32, #tpu.memory_space<vmem>>, vector<8x128xf32>,
    return
  }
}

</mosaic_0001>

<bundles_post_ra>
// kernel: tpu_custom_call.1
= control target key start
LH: loop header
LB: loop body
LE: loop exit
PB: predicated region body
PF: predicated region fallthrough
CT: control target
= control target key end

     0   :  { %6 = vsyncpa [#allocation3], 0  ;;  %s106_s0 = inlined_call_operand.hbm [shape: f32[8,128], index: 0, kind: input, shape index: {}]   ;;  %s107_s1 = inlined_call_operand.hbm [shape: f32[8,128], index: 1, kind: output, shape index: {}]  }
   0x1   :  { %7 = vsyncpa [#allocation4], 0  ;;  %s87_s6 = smov [#allocation2]  }
   0x2   :  { %s14_s7 = sshll.u32 %s87_s6, 4  ;;  %s15_s7 = int_to_ptr.vmem [resolvable:$true] %s14_s7 }
   0x3   :  { %s51_s8 = scalar_lea.vmem %s15_s7, 128  ;;  %p56_p1 = scmp.lt.s32.totalorder %s15_s7, %s15_s7 }
   0x4   :  { %p52_p0 = scmp.ne.s32.totalorder %s15_s7, %s51_s8  ;;  %p57_p2 = scmp.lt.s32.totalorder %s51_s8, %s51_s8 }
   0x6   :  { %p58_p3 = por %p57_p2, %p56_p1 }
   0x8   :  { %p59_p4 = pnand %p58_p3, %p52_p0 }
   0xa   :  { %62 = shalt.err (!%p59_p4)
}
   0xb   :  { %17 = dma.hbm_to_vmem [thread:$0]  %s106_s0, 128, %s15_s7, [#allocation3]  }
   0xc   :  { %83 = dma.done.wait [#allocation3], 128  }
   0xd   :  { %84 = vsyncadd [#allocation3], 4294967168  ;;  %v21_v0 = vld [vmem:[#allocation2] sm:$0xff]  ;;  %s88_s11 = smov 1   ;;  %s89_s12 = smov [#allocation5]  }
   0xe   :  { %22 = vrot.lane.b32.xlu0 %v21_v0, %s88_s11  ;;  %s31_s13 = sshll.u32 %s89_s12, 4  ;;  %s32_s13 = int_to_ptr.vmem [resolvable:$true] %s31_s13 }
   0xf   :  { %s63_s14 = scalar_lea.vmem %s32_s13, 128  ;;  %p68_p6 = scmp.lt.s32.totalorder %s32_s13, %s32_s13 }
  0x10   :  { %p64_p5 = scmp.ne.s32.totalorder %s32_s13, %s63_s14  ;;  %p69_p7 = scmp.lt.s32.totalorder %s63_s14, %s63_s14 }
  0x12   :  { %p70_p8 = por %p69_p7, %p68_p6 }
  0x14   :  { %p71_p9 = pnand %p70_p8, %p64_p5 }
  0x80   :  { %v23_v1 = vpop.permute.xlu0 %22 }
  0x81   :  { %24 = vst [vmem:[#allocation5] sm:$0xff] %v23_v1 }
  0x82   :  { %74 = shalt.err (!%p71_p9)
}
  0x83   :  { %34 = dma.vmem_to_hbm [thread:$0]  %s32_s13, 128, %s107_s1, [#allocation4]  }
  0x84   :  { %85 = dma.done.wait [#allocation4], 128  }
  0x85   :  { %86 = vsyncadd [#allocation4], 4294967168 }
  0x86   :  { %38 = vsyncpa [#allocation3], 1 }
  0x87   :  { %39 = vsyncpa [#allocation4], 1 }

</bundles_post_ra>
